<compile_context>
chip_gen: v7x
topology: tpu7x:2x2x1
jax: 0.10.0
libtpu: 0.0.40
codegen_flags: <defaults>
</compile_context>

<pallas_src>
import jax
import jax.numpy as jnp
from jax.experimental import pallas as pl
from jax.experimental.pallas import tpu as pltpu

IN_FEATURES = 5   # layer:  Linear(5, 5, bias=False)
HIDDEN = 5
OUT_FEATURES = 1  # layer1: Linear(5, 1)


def _round_up(x, m):
    return ((x + m - 1) // m) * m


def _mlp_kernel(w1_ref, w2_ref, b2_ref, x_ref, o_ref):
    """One lane-dense batch tile, VPU-only.

    w1_ref: (25,) f32 SMEM  -- layer.weight flattened row-major, W1[i,k] = w1_ref[i*5+k]
    w2_ref: (5,)  f32 SMEM  -- layer1.weight[0, :]
    b2_ref: (1,)  f32 SMEM  -- layer1.bias
    x_ref:  (5, TB) f32 VMEM -- x.T tile   (features on sublanes, batch on lanes)
    o_ref:  (1, TB) f32 VMEM -- out.T tile (lane-dense output)
    """
    x = x_ref[...]                                  # (5, TB): single tile load
    tb = x.shape[1]
    out = jnp.zeros((1, tb), dtype=jnp.float32)
    # out[0, b] = sum_i W2[0, i] * relu( sum_k W1[i, k] * x[k, b] ) + b2
    for i in range(HIDDEN):
        h_i = w1_ref[i * IN_FEATURES] * x[0:1, :]   # (1, TB)
        for k in range(1, IN_FEATURES):
            h_i = h_i + w1_ref[i * IN_FEATURES + k] * x[k:k + 1, :]
        out = out + w2_ref[i] * jnp.maximum(h_i, 0.0)
    out = out + b2_ref[0]
    o_ref[...] = out.astype(o_ref.dtype)


def mini_bnn_forward(x, w1, w2, b2, *, tb=1024):
    """x: (B, 5) f32; w1: (5, 5); w2: (1, 5); b2: (1,)  ->  (B, 1) f32."""
    B = x.shape[0]

    # Batch tile: multiple of 128 lanes, capped so tiny batches use one tile.
    tb = max(128, min(tb, _round_up(B, 128)))
    b_pad = _round_up(B, tb)

    # Lane-dense transposed input: (5, B_pad), zero-padded tail rows.
    x_t = jnp.zeros((IN_FEATURES, b_pad), x.dtype).at[:, :B].set(x.T)

    # Tiny parameters -> flat 1-D f32 arrays destined for SMEM.
    w1_flat = w1.reshape(-1).astype(jnp.float32)    # (25,)
    w2_flat = w2.reshape(-1).astype(jnp.float32)    # (5,)
    b2_flat = b2.reshape(-1).astype(jnp.float32)    # (1,)

    grid = (b_pad // tb,)
    out_t = pl.pallas_call(
        _mlp_kernel,
        out_shape=jax.ShapeDtypeStruct((OUT_FEATURES, b_pad), x.dtype),
        grid=grid,
        in_specs=[
            pl.BlockSpec(memory_space=pltpu.MemorySpace.SMEM),     # w1 (25,)
            pl.BlockSpec(memory_space=pltpu.MemorySpace.SMEM),     # w2 (5,)
            pl.BlockSpec(memory_space=pltpu.MemorySpace.SMEM),     # b2 (1,)
            pl.BlockSpec((IN_FEATURES, tb), lambda i: (0, i)),     # x.T tile
        ],
        out_specs=pl.BlockSpec((OUT_FEATURES, tb), lambda i: (0, i)),
        compiler_params=pltpu.CompilerParams(
            dimension_semantics=("parallel",)),
    )(w1_flat, w2_flat, b2_flat, x_t)

    # Back to the PyTorch (B, 1) layout; drop batch padding.
    return out_t[0, :B].reshape(B, 1)


if __name__ == "__main__":
    key = jax.random.PRNGKey(0)
    kx, k1, k2, k3 = jax.random.split(key, 4)

    B = 8
    # Deterministic parameter init (mimics nn.Linear uniform(-1/sqrt(fan_in), ...)).
    bound = 1.0 / jnp.sqrt(5.0)
    w1 = jax.random.uniform(k1, (5, 5), jnp.float32, -bound, bound)   # layer.weight
    w2 = jax.random.uniform(k2, (1, 5), jnp.float32, -bound, bound)   # layer1.weight
    b2 = jax.random.uniform(k3, (1,),   jnp.float32, -bound, bound)   # layer1.bias

    x = jax.random.normal(kx, (B, 5), jnp.float32)

    out = mini_bnn_forward(x, w1, w2, b2)
    out = jax.block_until_ready(out)

    # Pure-JAX reference check.
    ref = jnp.maximum(x @ w1.T, 0.0) @ w2.T + b2
    assert out.shape == (B, 1)
    assert jnp.allclose(out, ref, atol=1e-5, rtol=1e-5)

    print("KERNEL_OK")
</pallas_src>

<mosaic_0001>
module attributes {stable_mosaic.version = 11 : i64} {
  func.func @_mlp_kernel(%arg0: i32, %arg1: memref<25xf32, #tpu.memory_space<smem>>, %arg2: memref<5xf32, #tpu.memory_space<smem>>, %arg3: memref<1xf32, #tpu.memory_space<smem>>, %arg4: memref<5x128xf32, #tpu.memory_space<vmem>>, %arg5: memref<1x128xf32, #tpu.memory_space<vmem>>) attributes {dimension_semantics = [#tpu.dimension_semantics<parallel>], iteration_bounds = array<i64: 1>, scalar_prefetch = 0 : i64, scratch_operands = 0 : i64, tpu.core_type = #tpu.core_type<tc>, window_params = [{transform_indices = @transform_0, window_bounds = array<i64: 25>}, {transform_indices = @transform_1, window_bounds = array<i64: 5>}, {transform_indices = @transform_2, window_bounds = array<i64: 1>}, {transform_indices = @transform_3, window_bounds = array<i64: 5, 128>}, {transform_indices = @transform_4, window_bounds = array<i64: 1, 128>}]} {
    %c0 = arith.constant 0 : index
    %c0_0 = arith.constant 0 : index
    %0 = vector.load %arg4[%c0, %c0_0] : memref<5x128xf32, #tpu.memory_space<vmem>>, vector<5x128xf32>
    %cst = arith.constant 0.000000e+00 : f32
    %1 = vector.broadcast %cst : f32 to vector<1x128xf32>
    %c0_1 = arith.constant 0 : index
    %2 = memref.load %arg1[%c0_1] : memref<25xf32, #tpu.memory_space<smem>>
    %3 = vector.extract_strided_slice %0 {offsets = [0, 0], sizes = [1, 128], strides = [1, 1]} : vector<5x128xf32> to vector<1x128xf32>
    %4 = vector.broadcast %2 : f32 to vector<1x128xf32>
    %5 = arith.mulf %4, %3 : vector<1x128xf32>
    %c1 = arith.constant 1 : index
    %6 = memref.load %arg1[%c1] : memref<25xf32, #tpu.memory_space<smem>>
    %7 = vector.extract_strided_slice %0 {offsets = [1, 0], sizes = [1, 128], strides = [1, 1]} : vector<5x128xf32> to vector<1x128xf32>
    %8 = vector.broadcast %6 : f32 to vector<1x128xf32>
    %9 = arith.mulf %8, %7 : vector<1x128xf32>
    %10 = arith.addf %5, %9 : vector<1x128xf32>
    %c2 = arith.constant 2 : index
    %11 = memref.load %arg1[%c2] : memref<25xf32, #tpu.memory_space<smem>>
    %12 = vector.extract_strided_slice %0 {offsets = [2, 0], sizes = [1, 128], strides = [1, 1]} : vector<5x128xf32> to vector<1x128xf32>
    %13 = vector.broadcast %11 : f32 to vector<1x128xf32>
    %14 = arith.mulf %13, %12 : vector<1x128xf32>
    %15 = arith.addf %10, %14 : vector<1x128xf32>
    %c3 = arith.constant 3 : index
    %16 = memref.load %arg1[%c3] : memref<25xf32, #tpu.memory_space<smem>>
    %17 = vector.extract_strided_slice %0 {offsets = [3, 0], sizes = [1, 128], strides = [1, 1]} : vector<5x128xf32> to vector<1x128xf32>
    %18 = vector.broadcast %16 : f32 to vector<1x128xf32>
    %19 = arith.mulf %18, %17 : vector<1x128xf32>
    %20 = arith.addf %15, %19 : vector<1x128xf32>
    %c4 = arith.constant 4 : index
    %21 = memref.load %arg1[%c4] : memref<25xf32, #tpu.memory_space<smem>>
    %22 = vector.extract_strided_slice %0 {offsets = [4, 0], sizes = [1, 128], strides = [1, 1]} : vector<5x128xf32> to vector<1x128xf32>
    %23 = vector.broadcast %21 : f32 to vector<1x128xf32>
    %24 = arith.mulf %23, %22 : vector<1x128xf32>
    %25 = arith.addf %20, %24 : vector<1x128xf32>
    %c0_2 = arith.constant 0 : index
    %26 = memref.load %arg2[%c0_2] : memref<5xf32, #tpu.memory_space<smem>>
    %cst_3 = arith.constant 0.000000e+00 : f32
    %27 = vector.broadcast %cst_3 : f32 to vector<1x128xf32>
    %28 = arith.maximumf %25, %27 : vector<1x128xf32>
    %29 = vector.broadcast %26 : f32 to vector<1x128xf32>
    %30 = arith.mulf %29, %28 : vector<1x128xf32>
    %31 = arith.addf %1, %30 : vector<1x128xf32>
    %c5 = arith.constant 5 : index
    %32 = memref.load %arg1[%c5] : memref<25xf32, #tpu.memory_space<smem>>
    %33 = vector.extract_strided_slice %0 {offsets = [0, 0], sizes = [1, 128], strides = [1, 1]} : vector<5x128xf32> to vector<1x128xf32>
    %34 = vector.broadcast %32 : f32 to vector<1x128xf32>
    %35 = arith.mulf %34, %33 : vector<1x128xf32>
    %c6 = arith.constant 6 : index
    %36 = memref.load %arg1[%c6] : memref<25xf32, #tpu.memory_space<smem>>
    %37 = vector.extract_strided_slice %0 {offsets = [1, 0], sizes = [1, 128], strides = [1, 1]} : vector<5x128xf32> to vector<1x128xf32>
    %38 = vector.broadcast %36 : f32 to vector<1x128xf32>
    %39 = arith.mulf %38, %37 : vector<1x128xf32>
    %40 = arith.addf %35, %39 : vector<1x128xf32>
    %c7 = arith.constant 7 : index
    %41 = memref.load %arg1[%c7] : memref<25xf32, #tpu.memory_space<smem>>
    %42 = vector.extract_strided_slice %0 {offsets = [2, 0], sizes = [1, 128], strides = [1, 1]} : vector<5x128xf32> to vector<1x128xf32>
    %43 = vector.broadcast %41 : f32 to vector<1x128xf32>
    %44 = arith.mulf %43, %42 : vector<1x128xf32>
    %45 = arith.addf %40, %44 : vector<1x128xf32>
    %c8 = arith.constant 8 : index
    %46 = memref.load %arg1[%c8] : memref<25xf32, #tpu.memory_space<smem>>
    %47 = vector.extract_strided_slice %0 {offsets = [3, 0], sizes = [1, 128], strides = [1, 1]} : vector<5x128xf32> to vector<1x128xf32>
    %48 = vector.broadcast %46 : f32 to vector<1x128xf32>
    %49 = arith.mulf %48, %47 : vector<1x128xf32>
    %50 = arith.addf %45, %49 : vector<1x128xf32>
    %c9 = arith.constant 9 : index
    %51 = memref.load %arg1[%c9] : memref<25xf32, #tpu.memory_space<smem>>
    %52 = vector.extract_strided_slice %0 {offsets = [4, 0], sizes = [1, 128], strides = [1, 1]} : vector<5x128xf32> to vector<1x128xf32>
    %53 = vector.broadcast %51 : f32 to vector<1x128xf32>
    %54 = arith.mulf %53, %52 : vector<1x128xf32>
    %55 = arith.addf %50, %54 : vector<1x128xf32>
    %c1_4 = arith.constant 1 : index
    %56 = memref.load %arg2[%c1_4] : memref<5xf32, #tpu.memory_space<smem>>
    %cst_5 = arith.constant 0.000000e+00 : f32
    %57 = vector.broadcast %cst_5 : f32 to vector<1x128xf32>
    %58 = arith.maximumf %55, %57 : vector<1x128xf32>
    %59 = vector.broadcast %56 : f32 to vector<1x128xf32>
    %60 = arith.mulf %59, %58 : vector<1x128xf32>
    %61 = arith.addf %31, %60 : vector<1x128xf32>
    %c10 = arith.constant 10 : index
    %62 = memref.load %arg1[%c10] : memref<25xf32, #tpu.memory_space<smem>>
    %63 = vector.extract_strided_slice %0 {offsets = [0, 0], sizes = [1, 128], strides = [1, 1]} : vector<5x128xf32> to vector<1x128xf32>
    %64 = vector.broadcast %62 : f32 to vector<1x128xf32>
    %65 = arith.mulf %64, %63 : vector<1x128xf32>
    %c11 = arith.constant 11 : index
    %66 = memref.load %arg1[%c11] : memref<25xf32, #tpu.memory_space<smem>>
    %67 = vector.extract_strided_slice %0 {offsets = [1, 0], sizes = [1, 128], strides = [1, 1]} : vector<5x128xf32> to vector<1x128xf32>
    %68 = vector.broadcast %66 : f32 to vector<1x128xf32>
    %69 = arith.mulf %68, %67 : vector<1x128xf32>
    %70 = arith.addf %65, %69 : vector<1x128xf32>
    %c12 = arith.constant 12 : index
    %71 = memref.load %arg1[%c12] : memref<25xf32, #tpu.memory_space<smem>>
    %72 = vector.extract_strided_slice %0 {offsets = [2, 0], sizes = [1, 128], strides = [1, 1]} : vector<5x128xf32> to vector<1x128xf32>
    %73 = vector.broadcast %71 : f32 to vector<1x128xf32>
    %74 = arith.mulf %73, %72 : vector<1x128xf32>
    %75 = arith.addf %70, %74 : vector<1x128xf32>
    %c13 = arith.constant 13 : index
    %76 = memref.load %arg1[%c13] : memref<25xf32, #tpu.memory_space<smem>>
    %77 = vector.extract_strided_slice %0 {offsets = [3, 0], sizes = [1, 128], strides = [1, 1]} : vector<5x128xf32> to vector<1x128xf32>
    %78 = vector.broadcast %76 : f32 to vector<1x128xf32>
    %79 = arith.mulf %78, %77 : vector<1x128xf32>
    %80 = arith.addf %75, %79 : vector<1x128xf32>
    %c14 = arith.constant 14 : index
    %81 = memref.load %arg1[%c14] : memref<25xf32, #tpu.memory_space<smem>>
    %82 = vector.extract_strided_slice %0 {offsets = [4, 0], sizes = [1, 128], strides = [1, 1]} : vector<5x128xf32> to vector<1x128xf32>
    %83 = vector.broadcast %81 : f32 to vector<1x128xf32>
    %84 = arith.mulf %83, %82 : vector<1x128xf32>
    %85 = arith.addf %80, %84 : vector<1x128xf32>
    %c2_6 = arith.constant 2 : index
    %86 = memref.load %arg2[%c2_6] : memref<5xf32, #tpu.memory_space<smem>>
    %cst_7 = arith.constant 0.000000e+00 : f32
    %87 = vector.broadcast %cst_7 : f32 to vector<1x128xf32>
    %88 = arith.maximumf %85, %87 : vector<1x128xf32>
    %89 = vector.broadcast %86 : f32 to vector<1x128xf32>
    %90 = arith.mulf %89, %88 : vector<1x128xf32>
    %91 = arith.addf %61, %90 : vector<1x128xf32>
    %c15 = arith.constant 15 : index
    %92 = memref.load %arg1[%c15] : memref<25xf32, #tpu.memory_space<smem>>
    %93 = vector.extract_strided_slice %0 {offsets = [0, 0], sizes = [1, 128], strides = [1, 1]} : vector<5x128xf32> to vector<1x128xf32>
    %94 = vector.broadcast %92 : f32 to vector<1x128xf32>
    %95 = arith.mulf %94, %93 : vector<1x128xf32>
    %c16 = arith.constant 16 : index
    %96 = memref.load %arg1[%c16] : memref<25xf32, #tpu.memory_space<smem>>
    %97 = vector.extract_strided_slice %0 {offsets = [1, 0], sizes = [1, 128], strides = [1, 1]} : vector<5x128xf32> to vector<1x128xf32>
    %98 = vector.broadcast %96 : f32 to vector<1x128xf32>
    %99 = arith.mulf %98, %97 : vector<1x128xf32>
    %100 = arith.addf %95, %99 : vector<1x128xf32>
    %c17 = arith.constant 17 : index
    %101 = memref.load %arg1[%c17] : memref<25xf32, #tpu.memory_space<smem>>
    %102 = vector.extract_strided_slice %0 {offsets = [2, 0], sizes = [1, 128], strides = [1, 1]} : vector<5x128xf32> to vector<1x128xf32>
    %103 = vector.broadcast %101 : f32 to vector<1x128xf32>
    %104 = arith.mulf %103, %102 : vector<1x128xf32>
    %105 = arith.addf %100, %104 : vector<1x128xf32>
    %c18 = arith.constant 18 : index
    %106 = memref.load %arg1[%c18] : memref<25xf32, #tpu.memory_space<smem>>
    %107 = vector.extract_strided_slice %0 {offsets = [3, 0], sizes = [1, 128], strides = [1, 1]} : vector<5x128xf32> to vector<1x128xf32>
    %108 = vector.broadcast %106 : f32 to vector<1x128xf32>
    %109 = arith.mulf %108, %107 : vector<1x128xf32>
    %110 = arith.addf %105, %109 : vector<1x128xf32>
    %c19 = arith.constant 19 : index
    %111 = memref.load %arg1[%c19] : memref<25xf32, #tpu.memory_space<smem>>
    %112 = vector.extract_strided_slice %0 {offsets = [4, 0], sizes = [1, 128], strides = [1, 1]} : vector<5x128xf32> to vector<1x128xf32>
    %113 = vector.broadcast %111 : f32 to vector<1x128xf32>
    %114 = arith.mulf %113, %112 : vector<1x128xf32>
    %115 = arith.addf %110, %114 : vector<1x128xf32>
    %c3_8 = arith.constant 3 : index
    %116 = memref.load %arg2[%c3_8] : memref<5xf32, #tpu.memory_space<smem>>
    %cst_9 = arith.constant 0.000000e+00 : f32
    %117 = vector.broadcast %cst_9 : f32 to vector<1x128xf32>
    %118 = arith.maximumf %115, %117 : vector<1x128xf32>
    %119 = vector.broadcast %116 : f32 to vector<1x128xf32>
    %120 = arith.mulf %119, %118 : vector<1x128xf32>
    %121 = arith.addf %91, %120 : vector<1x128xf32>
    %c20 = arith.constant 20 : index
    %122 = memref.load %arg1[%c20] : memref<25xf32, #tpu.memory_space<smem>>
    %123 = vector.extract_strided_slice %0 {offsets = [0, 0], sizes = [1, 128], strides = [1, 1]} : vector<5x128xf32> to vector<1x128xf32>
    %124 = vector.broadcast %122 : f32 to vector<1x128xf32>
    %125 = arith.mulf %124, %123 : vector<1x128xf32>
    %c21 = arith.constant 21 : index
    %126 = memref.load %arg1[%c21] : memref<25xf32, #tpu.memory_space<smem>>
    %127 = vector.extract_strided_slice %0 {offsets = [1, 0], sizes = [1, 128], strides = [1, 1]} : vector<5x128xf32> to vector<1x128xf32>
    %128 = vector.broadcast %126 : f32 to vector<1x128xf32>
    %129 = arith.mulf %128, %127 : vector<1x128xf32>
    %130 = arith.addf %125, %129 : vector<1x128xf32>
    %c22 = arith.constant 22 : index
    %131 = memref.load %arg1[%c22] : memref<25xf32, #tpu.memory_space<smem>>
    %132 = vector.extract_strided_slice %0 {offsets = [2, 0], sizes = [1, 128], strides = [1, 1]} : vector<5x128xf32> to vector<1x128xf32>
    %133 = vector.broadcast %131 : f32 to vector<1x128xf32>
    %134 = arith.mulf %133, %132 : vector<1x128xf32>
    %135 = arith.addf %130, %134 : vector<1x128xf32>
    %c23 = arith.constant 23 : index
    %136 = memref.load %arg1[%c23] : memref<25xf32, #tpu.memory_space<smem>>
    %137 = vector.extract_strided_slice %0 {offsets = [3, 0], sizes = [1, 128], strides = [1, 1]} : vector<5x128xf32> to vector<1x128xf32>
    %138 = vector.broadcast %136 : f32 to vector<1x128xf32>
    %139 = arith.mulf %138, %137 : vector<1x128xf32>
    %140 = arith.addf %135, %139 : vector<1x128xf32>
    %c24 = arith.constant 24 : index
    %141 = memref.load %arg1[%c24] : memref<25xf32, #tpu.memory_space<smem>>
    %142 = vector.extract_strided_slice %0 {offsets = [4, 0], sizes = [1, 128], strides = [1, 1]} : vector<5x128xf32> to vector<1x128xf32>
    %143 = vector.broadcast %141 : f32 to vector<1x128xf32>
    %144 = arith.mulf %143, %142 : vector<1x128xf32>
    %145 = arith.addf %140, %144 : vector<1x128xf32>
    %c4_10 = arith.constant 4 : index
    %146 = memref.load %arg2[%c4_10] : memref<5xf32, #tpu.memory_space<smem>>
    %cst_11 = arith.constant 0.000000e+00 : f32
    %147 = vector.broadcast %cst_11 : f32 to vector<1x128xf32>
    %148 = arith.maximumf %145, %147 : vector<1x128xf32>
    %149 = vector.broadcast %146 : f32 to vector<1x128xf32>
    %150 = arith.mulf %149, %148 : vector<1x128xf32>
    %151 = arith.addf %121, %150 : vector<1x128xf32>
    %c0_12 = arith.constant 0 : index
    %152 = memref.load %arg3[%c0_12] : memref<1xf32, #tpu.memory_space<smem>>
    %153 = vector.broadcast %152 : f32 to vector<1x128xf32>
    %154 = arith.addf %151, %153 : vector<1x128xf32>
    %c0_13 = arith.constant 0 : index
    %c0_14 = arith.constant 0 : index
    %155 = vector.load %arg5[%c0_13, %c0_14] : memref<1x128xf32, #tpu.memory_space<vmem>>, vector<1x128xf32>
    tpu.vector_store %arg5[%c0_13, %c0_14], %154 {strides = array<i32>} : memref<1x128xf32, #tpu.memory_space<vmem>>, vector<1x128xf32>,
    return
  }
  func.func @transform_0(%arg0: i32) -> i32 {
    %c0_i32 = arith.constant 0 : i32
    %c0_i32_0 = arith.constant 0 : i32
    return %c0_i32 : i32
  }
  func.func @transform_1(%arg0: i32) -> i32 {
    %c0_i32 = arith.constant 0 : i32
    %c0_i32_0 = arith.constant 0 : i32
    return %c0_i32 : i32
  }
  func.func @transform_2(%arg0: i32) -> i32 {
    %c0_i32 = arith.constant 0 : i32
    %c0_i32_0 = arith.constant 0 : i32
    return %c0_i32 : i32
  }
  func.func @transform_3(%arg0: i32) -> (i32, i32) {
    %c0_i32 = arith.constant 0 : i32
    %c0_i32_0 = arith.constant 0 : i32
    return %c0_i32, %arg0 : i32, i32
  }
  func.func @transform_4(%arg0: i32) -> (i32, i32) {
    %c0_i32 = arith.constant 0 : i32
    %c0_i32_0 = arith.constant 0 : i32
    return %c0_i32, %arg0 : i32, i32
  }
}

</mosaic_0001>

<bundles_post_ra>
// kernel: tpu_custom_call.1
= control target key start
LH: loop header
LB: loop body
LE: loop exit
PB: predicated region body
PF: predicated region fallthrough
CT: control target
= control target key end

     0   :  { %10 = vsyncpa [#allocation5], 0  ;;  %s473_s0 = inlined_call_operand.vmem [shape: f32[25], index: 0, kind: input, shape index: {}]   ;;  %s474_s1 = inlined_call_operand.vmem [shape: f32[5], index: 1, kind: input, shape index: {}]   ;;  %s475_s2 = inlined_call_operand.<no memory space> [shape: f32[1], index: 2, kind: input, shape index: {}]   ;;  %s476_s3 = inlined_call_operand.vmem [shape: f32[5,128], index: 3, kind: input, shape index: {}]   ;;  %s477_s4 = inlined_call_operand.hbm [shape: f32[1,128], index: 4, kind: output, shape index: {}]  }
   0x1   :  { %11 = vsyncpa [#allocation7], 0 }
   0x2   :  { %12 = vsyncpa [#allocation4], 0  ;;  %s19_s17 = sshll.u32 %s473_s0, 4  ;;  %s29_s20 = sshll.u32 %s474_s1, 4  ;;  %s20_s17 = int_to_ptr.vmem [resolvable:$true] %s19_s17  ;;  %s30_s20 = int_to_ptr.vmem [resolvable:$true] %s29_s20 }
   0x3   :  { %s276_s21 = scalar_lea.vmem %s20_s17, 16  ;;  %p281_p1 = scmp.lt.s32.totalorder %s20_s17, %s20_s17 }
   0x4   :  { %p277_p0 = scmp.ne.s32.totalorder %s20_s17, %s276_s21  ;;  %p282_p2 = scmp.lt.s32.totalorder %s276_s21, %s276_s21 }
   0x6   :  { %p283_p3 = por %p282_p2, %p281_p1 }
   0x8   :  { %p284_p4 = pnand %p283_p3, %p277_p0 }
   0xa   :  { %287 = shalt.err (!%p284_p4)
}
   0xb   :  { %s328_s22 = smov [#allocation3]   ;;  %s288_s23 = scalar_lea.vmem %s30_s20, 16 }
   0xc   :  { %22 = dma.vmem_to_smem %s20_s17, 16, %s328_s22, [#allocation5]  }
   0xd   :  { %p289_p5 = scmp.ne.s32.totalorder %s30_s20, %s288_s23  ;;  %p293_p6 = scmp.lt.s32.totalorder %s30_s20, %s30_s20 }
   0xe   :  { %p294_p7 = scmp.lt.s32.totalorder %s288_s23, %s288_s23 }
  0x10   :  { %p295_p8 = por %p294_p7, %p293_p6 }
  0x12   :  { %p296_p9 = pnand %p295_p8, %p289_p5 }
  0x14   :  { %299 = shalt.err (!%p296_p9)
}
  0x15   :  { %s329_s0 = smov [#allocation6]  }
  0x16   :  { %32 = dma.vmem_to_smem %s30_s20, 16, %s329_s0, [#allocation7]  }
  0x17   :  { %322 = dma.done.wait [#allocation5], 16  }
  0x18   :  { %323 = vsyncadd [#allocation5], 4294967280 }
  0x19   :  { %324 = dma.done.wait [#allocation7], 16  }
  0x1a   :  { %325 = vsyncadd [#allocation7], 4294967280 }
  0x1b   :  { %43 = sfence }
  0x1c   :  { %s45_s1 = sld [smem:[#allocation3]]  ;;  %s245_s24 = sld [smem:[#allocation3 + $0x1]]  ;;  %v365_v0 = vld [vmem:[%s476_s3] sm:$0x1f] }
  0x1d   :  { %s246_s25 = sld [smem:[#allocation3 + $0x2]]  ;;  %s247_s26 = sld [smem:[#allocation3 + $0x3]] }
  0x1e   :  { %s248_s27 = sld [smem:[#allocation3 + $0x4]]  ;;  %s249_s28 = sld [smem:[#allocation3 + $0x5]] }
  0x1f   :  { %s250_s29 = sld [smem:[#allocation3 + $0x6]]  ;;  %s367_s6 = sld [smem:[#allocation3 + $0x7]] }
  0x20   :  { %s369_s7 = sld [smem:[#allocation3 + $0x8]]  ;;  %s371_s8 = sld [smem:[#allocation3 + $0x9]] }
  0x21   :  { %s373_s9 = sld [smem:[#allocation3 + $0xa]]  ;;  %s377_s10 = sld [smem:[#allocation3 + $0xb]] }
  0x22   :  { %v46_v1 = vstv %s45_s1  ;;  %v49_v2 = vstv %s245_s24  ;;  %s379_s3 = sld [smem:[#allocation3 + $0xc]]  ;;  %s383_s11 = sld [smem:[#allocation3 + $0xd]] }
  0x23   :  { %v47_v3 = vmul.f32 %v46_v1, %v365_v0  ;;  %v50_v4 = vmul.f32 %v49_v2, %v365_v0  ;;  %v56_v5 = vstv %s246_s25  ;;  %v63_v6 = vstv %s247_s26  ;;  %s386_s12 = sld [smem:[#allocation6]]  ;;  %s388_s13 = sld [smem:[#allocation3 + $0xe]] }
  0x24   :  { %v57_v7 = vmul.f32 %v56_v5, %v365_v0  ;;  %v64_v8 = vmul.f32 %v63_v6, %v365_v0  ;;  %v70_v9 = vstv %s248_s27  ;;  %v82_v12 = vstv %s249_s28  ;;  %s392_s14 = sld [smem:[#allocation6 + $0x1]]  ;;  %s396_s15 = sld [smem:[#allocation3 + $0xf]] }
  0x25   :  { %v52_v10 = vrot.slane %v50_v4, 1  ;;  %v71_v11 = vmul.f32 %v70_v9, %v365_v0  ;;  %v85_v13 = vstv %s250_s29  ;;  %v83_v15 = vmul.f32 %v82_v12, %v365_v0  ;;  %s398_s16 = sld [smem:[#allocation3 + $0x10]]  ;;  %s405_s17 = sld [smem:[#allocation3 + $0x11]] }
  0x26   :  { %v59_v14 = vrot.slane %v57_v7, 2  ;;  %v86_v16 = vmul.f32 %v85_v13, %v365_v0  ;;  %v66_v18 = vrot.slane %v64_v8, 3  ;;  %v92_v19 = vstv %s367_s6  ;;  %s407_s18 = sld [smem:[#allocation3 + $0x12]]  ;;  %s414_s20 = sld [smem:[#allocation3 + $0x13]] }
  0x27   :  { %v54_v17 = vadd.f32 %v52_v10, %v47_v3  ;;  %v99_v20 = vstv %s369_s7  ;;  %v93_v22 = vmul.f32 %v92_v19, %v365_v0  ;;  %v106_v24 = vstv %s371_s8  ;;  %s410_s19 = sld [smem:[#allocation6 + $0x2]]  ;;  %s416_s21 = sld [smem:[#allocation3 + $0x14]] }
  0x28   :  { %v88_v21 = vrot.slane %v86_v16, 1  ;;  %v100_v23 = vmul.f32 %v99_v20, %v365_v0  ;;  %v73_v26 = vrot.slane %v71_v11, 4  ;;  %v107_v27 = vmul.f32 %v106_v24, %v365_v0  ;;  %s424_s22 = sld [smem:[#allocation3 + $0x15]]  ;;  %s427_s23 = sld [smem:[#allocation3 + $0x16]] }
  0x29   :  { %v61_v25 = vadd.f32 %v59_v14, %v54_v17  ;;  %v118_v28 = vstv %s373_s9  ;;  %v95_v30 = vrot.slane %v93_v22, 2  ;;  %v121_v35 = vstv %s377_s10  ;;  %s432_s0 = sld [smem:[#allocation3 + $0x17]]  ;;  %s434_s1 = sld [smem:[#allocation3 + $0x18]] }
  0x2a   :  { %v90_v29 = vadd.f32 %v88_v21, %v83_v15  ;;  %v102_v31 = vrot.slane %v100_v23, 3  ;;  %v119_v32 = vmul.f32 %v118_v28, %v365_v0  ;;  %v109_v34 = vrot.slane %v107_v27, 4  ;;  %s445_s24 = sld [smem:[#allocation6 + $0x3]]  ;;  %s272_s25 = sld [smem:[#allocation6 + $0x4]] }
  0x2b   :  { %v68_v33 = vadd.f32 %v66_v18, %v61_v25  ;;  %v128_v36 = vstv %s379_s3  ;;  %v122_v38 = vmul.f32 %v121_v35, %v365_v0  ;;  %v135_v40 = vstv %s383_s11  ;;  %s330_s28 = smov [#allocation8]  }
  0x2c   :  { %v97_v37 = vadd.f32 %v95_v30, %v90_v29  ;;  %v129_v39 = vmul.f32 %v128_v36, %v365_v0  ;;  %v78_v42 = vstv %s386_s12  ;;  %v136_v43 = vmul.f32 %v135_v40, %v365_v0  ;;  %s235_s29 = sshll.u32 %s330_s28, 4  ;;  %s236_s29 = int_to_ptr.vmem [resolvable:$true] %s235_s29 }
  0x2d   :  { %v75_v41 = vadd.f32 %v73_v26, %v68_v33  ;;  %v142_v44 = vstv %s388_s13  ;;  %v124_v46 = vrot.slane %v122_v38, 1  ;;  %v114_v50 = vstv %s392_s14  ;;  %s300_s30 = scalar_lea.vmem %s236_s29, 16  ;;  %s304_s5 = scalar_lea.vmem %s236_s29, 32 }
  0x2e   :  { %v104_v45 = vadd.f32 %v102_v31, %v97_v37  ;;  %v131_v47 = vrot.slane %v129_v39, 2  ;;  %v143_v48 = vmul.f32 %v142_v44, %v365_v0  ;;  %v154_v51 = vstv %s396_s15  ;;  %p301_p10 = scmp.ne.s32.totalorder %s236_s29, %s300_s30  ;;  %p305_p11 = scmp.lt.s32.totalorder %s236_s29, %s236_s29 }
  0x2f   :  { %v77_v49 = vmax.f32 %v75_v41, 0.0  ;;  %v157_v52 = vstv %s398_s16  ;;  %v126_v54 = vadd.f32 %v124_v46, %v119_v32  ;;  %v138_v55 = vrot.slane %v136_v43, 3  ;;  %p306_p12 = scmp.lt.s32.totalorder %s304_s5, %s300_s30 }
  0x30   :  { %v111_v53 = vadd.f32 %v109_v34, %v104_v45  ;;  %v145_v56 = vrot.slane %v143_v48, 4  ;;  %v155_v57 = vmul.f32 %v154_v51, %v365_v0  ;;  %v158_v58 = vmul.f32 %v157_v52, %v365_v0 }
  0x31   :  { %v164_v59 = vstv %s405_s17  ;;  %v171_v60 = vstv %s407_s18  ;;  %v133_v62 = vadd.f32 %v131_v47, %v126_v54  ;;  %v150_v2 = vstv %s410_s19  ;;  %p307_p13 = por %p306_p12, %p305_p11 }
  0x32   :  { %v113_v61 = vmax.f32 %v111_v53, 0.0  ;;  %v165_v63 = vmul.f32 %v164_v59, %v365_v0  ;;  %v172_v1 = vmul.f32 %v171_v60, %v365_v0  ;;  %v160_v3 = vrot.slane %v158_v58, 1 }
  0x33   :  { %v178_v4 = vstv %s414_s20  ;;  %v190_v5 = vstv %s416_s21  ;;  %v79_v6 = vmul.f32 %v78_v42, %v77_v49  ;;  %v140_v8 = vadd.f32 %v138_v55, %v133_v62  ;;  %p308_p0 = pnand %p307_p13, %p301_p10 }
  0x34   :  { %v115_v7 = vmul.f32 %v114_v50, %v113_v61  ;;  %v167_v9 = vrot.slane %v165_v63, 2  ;;  %v162_v10 = vadd.f32 %v160_v3, %v155_v57  ;;  %v174_v11 = vrot.slane %v172_v1, 3 }
  0x35   :  { %v179_v12 = vmul.f32 %v178_v4, %v365_v0  ;;  %v193_v13 = vstv %s424_s22  ;;  %v147_v14 = vadd.f32 %v145_v56, %v140_v8  ;;  %v191_v15 = vmul.f32 %v190_v5, %v365_v0 }
  0x36   :  { %v194_v16 = vmul.f32 %v193_v13, %v365_v0  ;;  %v200_v17 = vstv %s427_s23  ;;  %v169_v18 = vadd.f32 %v167_v9, %v162_v10  ;;  %v207_v21 = vstv %s432_s0 }
  0x37   :  { %v181_v19 = vrot.slane %v179_v12, 4  ;;  %v201_v20 = vmul.f32 %v200_v17, %v365_v0  ;;  %v149_v22 = vmax.f32 %v147_v14, 0.0  ;;  %v208_v24 = vmul.f32 %v207_v21, %v365_v0 }
  0x38   :  { %v196_v23 = vrot.slane %v194_v16, 1  ;;  %v214_v25 = vstv %s434_s1  ;;  %v176_v26 = vadd.f32 %v174_v11, %v169_v18  ;;  %v116_v29 = vadd.f32 %v115_v7, %v79_v6 }
  0x39   :  { %v203_v27 = vrot.slane %v201_v20, 2  ;;  %v215_v28 = vmul.f32 %v214_v25, %v365_v0  ;;  %v151_v30 = vmul.f32 %v150_v2, %v149_v22  ;;  %v210_v32 = vrot.slane %v208_v24, 3 }
  0x3a   :  { %v198_v31 = vadd.f32 %v196_v23, %v191_v15  ;;  %v183_v33 = vadd.f32 %v181_v19, %v176_v26  ;;  %v186_v34 = vstv %s445_s24  ;;  %v222_v42 = vstv %s272_s25 }
  0x3b   :  { %v217_v36 = vrot.slane %v215_v28, 4  ;;  %v152_v38 = vadd.f32 %v151_v30, %v116_v29  ;;  %v226_v0 = vstv %s475_s2 }
  0x3c   :  { %v205_v35 = vadd.f32 %v203_v27, %v198_v31  ;;  %v185_v37 = vmax.f32 %v183_v33, 0.0 }
  0x3e   :  { %v212_v39 = vadd.f32 %v210_v32, %v205_v35  ;;  %v187_v40 = vmul.f32 %v186_v34, %v185_v37 }
  0x40   :  { %v219_v41 = vadd.f32 %v217_v36, %v212_v39  ;;  %v188_v43 = vadd.f32 %v187_v40, %v152_v38 }
  0x42   :  { %v221_v44 = vmax.f32 %v219_v41, 0.0 }
  0x44   :  { %v223_v45 = vmul.f32 %v222_v42, %v221_v44 }
  0x46   :  { %v224_v46 = vadd.f32 %v223_v45, %v188_v43 }
  0x48   :  { %v227_v47 = vadd.f32 %v226_v0, %v224_v46 }
  0x4a   :  { %228 = vst [vmem:[#allocation8] sm:$0x1] %v227_v47 }
  0x4b   :  { %311 = shalt.err (!%p308_p0)
}
  0x4c   :  { %s312_s8 = scalar_lea.hbm %s477_s4, 16 }
  0x4d   :  { %p313_p1 = scmp.ne.s32.totalorder %s477_s4, %s312_s8  ;;  %p316_p2 = scmp.lt.u32.totalorder %s312_s8, %s477_s4 }
  0x4f   :  { %p318_p3 = pnand %p316_p2, %p313_p1 }
  0x51   :  { %321 = shalt.err (!%p318_p3)
}
  0x52   :  { %238 = dma.vmem_to_hbm [thread:$0]  %s236_s29, 16, %s477_s4, [#allocation4]  }
  0x53   :  { %326 = dma.done.wait [#allocation4], 16  }
  0x54   :  { %327 = vsyncadd [#allocation4], 4294967280 }
  0x55   :  { %242 = vsyncpa [#allocation4], 1 }
  0x56   :  { %243 = vsyncpa [#allocation5], 1 }
  0x57   :  { %244 = vsyncpa [#allocation7], 1 }

</bundles_post_ra>
